<compile_context>
chip_gen: v7x
topology: tpu7x:2x2x1
jax: 0.10.0
libtpu: 0.0.40
codegen_flags: <defaults>
</compile_context>

<pallas_src>
import jax
import jax.numpy as jnp
from jax import lax
from jax.experimental import pallas as pl
from jax.experimental.pallas import tpu as pltpu


# ---------------------------------------------------------------------------
# Pass 1: per-row (n, c) partial sums / sums-of-squares over one lane tile.
# Real elements sit on even lanes, imaginary on odd lanes (native layout of
# the trailing complex axis), separated with a lane-parity mask.
# ---------------------------------------------------------------------------
def _stats_kernel(x_ref, sr_ref, si_ref, qr_ref, qi_ref):
    x = x_ref[...].astype(jnp.float32)                          # (NC, tileL)
    par = jax.lax.broadcasted_iota(jnp.int32, x.shape, 1) % 2
    is_real = par == 0                                          # even lane -> real part
    xr = jnp.where(is_real, x, 0.0)
    xi = x - xr
    sr_ref[0] = jnp.sum(xr, axis=1, keepdims=True)              # (NC, 1)
    si_ref[0] = jnp.sum(xi, axis=1, keepdims=True)
    qr_ref[0] = jnp.sum(xr * xr, axis=1, keepdims=True)
    qi_ref[0] = jnp.sum(xi * xi, axis=1, keepdims=True)


# ---------------------------------------------------------------------------
# Pass 2: streaming normalize.  params columns: [scale_r, scale_i, shift_r, shift_i]
# per (n, c) row; lane parity selects the real/imag variant.
# ---------------------------------------------------------------------------
def _norm_kernel(p_ref, x_ref, o_ref):
    x = x_ref[...].astype(jnp.float32)                          # (NC, tileL)
    par = jax.lax.broadcasted_iota(jnp.int32, x.shape, 1) % 2
    is_real = par == 0
    scale = jnp.where(is_real, p_ref[:, 0:1], p_ref[:, 1:2])
    shift = jnp.where(is_real, p_ref[:, 2:3], p_ref[:, 3:4])
    o_ref[...] = (x * scale + shift).astype(o_ref.dtype)


def _pick_tile_l(L, NC, itemsize, target_bytes=2 << 20):
    """Largest multiple of 128 dividing L, sized so one block is ~target_bytes."""
    if L % 128 != 0:
        # TODO(synk): mask partial lane tiles for 128-indivisible spatial sizes;
        # fall back to a full-row block (always a legal block shape).
        return L
    cap = max(128, (target_bytes // max(1, itemsize * NC)) // 128 * 128)
    best, t = 128, 128
    while t <= min(L, cap):
        if L % t == 0:
            best = t
        t += 128
    return best


def cbatchnorm2d(x, gamma_r, beta_r, gamma_i, beta_i, *, eps=1e-5):
    """x: (N, C, H, W, 2) with [..., 0]=real, [..., 1]=imag.  Returns same shape."""
    N, C, H, W, two = x.shape
    assert two == 2, "last axis must be the (real, imag) pair"
    NC, L = N * C, H * W * 2
    x2 = x.reshape(NC, L)                         # free reshape of the native buffer
    tile_l = _pick_tile_l(L, NC, jnp.dtype(x.dtype).itemsize)
    T = L // tile_l
    cparams = pltpu.CompilerParams(
        dimension_semantics=("parallel",),        # independent tiles -> megacore-friendly
        vmem_limit_bytes=32 * 1024 * 1024,        # safe on v5e/v6e/v7x scoped VMEM
    )

    # ---- pass 1: partial sums per (n, c) row per lane tile -----------------
    part_shape = jax.ShapeDtypeStruct((T, NC, 1), jnp.float32)
    part_spec = pl.BlockSpec((1, NC, 1), lambda t: (t, 0, 0))
    sr, si, qr, qi = pl.pallas_call(
        _stats_kernel,
        out_shape=(part_shape,) * 4,
        grid=(T,),
        in_specs=[pl.BlockSpec((NC, tile_l), lambda t: (0, t))],
        out_specs=(part_spec,) * 4,
        compiler_params=cparams,
    )(x2)

    # ---- finalize stats (O(C) work, trivially cheap glue) ------------------
    cnt = float(N * H * W)

    def _per_channel(p):                          # (T, NC, 1) -> (C,)
        return p.sum(axis=0)[:, 0].reshape(N, C).sum(axis=0)

    sum_r, sum_i, sq_r, sq_i = map(_per_channel, (sr, si, qr, qi))
    mean_r, mean_i = sum_r / cnt, sum_i / cnt
    var_r = sq_r / cnt - mean_r * mean_r          # biased variance (torch training)
    var_i = sq_i / cnt - mean_i * mean_i
    scale_r = gamma_r * lax.rsqrt(var_r + eps)
    scale_i = gamma_i * lax.rsqrt(var_i + eps)
    shift_r = beta_r - mean_r * scale_r
    shift_i = beta_i - mean_i * scale_i
    params = jnp.stack([scale_r, scale_i, shift_r, shift_i], axis=1)   # (C, 4)
    params = jnp.tile(params, (N, 1))                                  # (N*C, 4), row = n*C + c

    # ---- pass 2: streaming normalize ---------------------------------------
    out2 = pl.pallas_call(
        _norm_kernel,
        out_shape=jax.ShapeDtypeStruct((NC, L), x.dtype),
        grid=(T,),
        in_specs=[pl.BlockSpec((NC, 4), lambda t: (0, 0)),
                  pl.BlockSpec((NC, tile_l), lambda t: (0, t))],
        out_specs=pl.BlockSpec((NC, tile_l), lambda t: (0, t)),
        compiler_params=cparams,
    )(params, x2)
    return out2.reshape(N, C, H, W, 2)


# ---------------------------------------------------------------------------
# Pure-JAX reference matching torch.nn.BatchNorm2d training-mode forward.
# ---------------------------------------------------------------------------
def _ref_cbatchnorm2d(x, gamma_r, beta_r, gamma_i, beta_i, eps=1e-5):
    def bn(v, g, b):
        m = v.mean(axis=(0, 2, 3), keepdims=True)
        var = v.var(axis=(0, 2, 3), keepdims=True)       # biased, as torch uses
        vhat = (v - m) / jnp.sqrt(var + eps)
        return vhat * g.reshape(1, -1, 1, 1) + b.reshape(1, -1, 1, 1)

    return jnp.stack([bn(x[..., 0], gamma_r, beta_r),
                      bn(x[..., 1], gamma_i, beta_i)], axis=-1)


if __name__ == "__main__":
    key = jax.random.PRNGKey(0)
    N, C, H, W = 2, 4, 16, 16
    k1, k2, k3, k4, k5 = jax.random.split(key, 5)

    x = jax.random.normal(k1, (N, C, H, W, 2), jnp.float32)
    # PyTorch init is gamma=1, beta=0; perturb deterministically to exercise
    # the affine path as well.
    gamma_r = 1.0 + 0.1 * jax.random.normal(k2, (C,), jnp.float32)
    gamma_i = 1.0 + 0.1 * jax.random.normal(k3, (C,), jnp.float32)
    beta_r = 0.1 * jax.random.normal(k4, (C,), jnp.float32)
    beta_i = 0.1 * jax.random.normal(k5, (C,), jnp.float32)

    out = cbatchnorm2d(x, gamma_r, beta_r, gamma_i, beta_i, eps=1e-5)
    out = jax.block_until_ready(out)

    ref = _ref_cbatchnorm2d(x, gamma_r, beta_r, gamma_i, beta_i, eps=1e-5)
    assert out.shape == ref.shape, (out.shape, ref.shape)
    max_err = float(jnp.abs(out - ref).max())
    assert jnp.allclose(out, ref, rtol=1e-4, atol=1e-4), max_err
    print("KERNEL_OK")
</pallas_src>

<mosaic_0001>
module attributes {stable_mosaic.version = 11 : i64} {
  func.func @_stats_kernel(%arg0: i32, %arg1: memref<8x512xf32, #tpu.memory_space<vmem>>, %arg2: memref<1x8x1xf32, #tpu.memory_space<vmem>>, %arg3: memref<1x8x1xf32, #tpu.memory_space<vmem>>, %arg4: memref<1x8x1xf32, #tpu.memory_space<vmem>>, %arg5: memref<1x8x1xf32, #tpu.memory_space<vmem>>) attributes {dimension_semantics = [#tpu.dimension_semantics<parallel>], iteration_bounds = array<i64: 1>, scalar_prefetch = 0 : i64, scratch_operands = 0 : i64, tpu.core_type = #tpu.core_type<tc>, window_params = [{transform_indices = @transform_0, window_bounds = array<i64: 8, 512>}, {transform_indices = @transform_1, window_bounds = array<i64: 1, 8, 1>}, {transform_indices = @transform_2, window_bounds = array<i64: 1, 8, 1>}, {transform_indices = @transform_3, window_bounds = array<i64: 1, 8, 1>}, {transform_indices = @transform_4, window_bounds = array<i64: 1, 8, 1>}]} {
    %c0 = arith.constant 0 : index
    %c0_0 = arith.constant 0 : index
    %0 = vector.load %arg1[%c0, %c0_0] : memref<8x512xf32, #tpu.memory_space<vmem>>, vector<8x512xf32>
    %1 = tpu.iota {dimensions = array<i32: 1>} : vector<8x512xi32>
    %c2_i32 = arith.constant 2 : i32
    %c0_i32 = arith.constant 0 : i32
    %2 = arith.cmpi eq, %c2_i32, %c0_i32 : i32
    %c1_i32 = arith.constant 1 : i32
    %3 = arith.select %2, %c1_i32, %c2_i32 : i32
    %4 = vector.broadcast %3 : i32 to vector<8x512xi32>
    %5 = arith.remsi %1, %4 : vector<8x512xi32>
    %c0_i32_1 = arith.constant 0 : i32
    %6 = vector.broadcast %c0_i32_1 : i32 to vector<8x512xi32>
    %7 = arith.cmpi ne, %5, %6 : vector<8x512xi32>
    %c0_i32_2 = arith.constant 0 : i32
    %8 = vector.broadcast %c0_i32_2 : i32 to vector<8x512xi32>
    %9 = arith.cmpi slt, %5, %8 : vector<8x512xi32>
    %c0_i32_3 = arith.constant 0 : i32
    %10 = arith.cmpi slt, %3, %c0_i32_3 : i32
    %11 = vector.broadcast %10 : i1 to vector<8x512xi1>
    %12 = vector.broadcast %11 : vector<8x512xi1> to vector<8x512xi1>
    %13 = arith.xori %9, %12 : vector<8x512xi1>
    %14 = arith.andi %13, %7 : vector<8x512xi1>
    %15 = vector.broadcast %3 : i32 to vector<8x512xi32>
    %16 = arith.addi %5, %15 : vector<8x512xi32>
    %17 = arith.select %14, %16, %5 : vector<8x512xi1>, vector<8x512xi32>
    %c0_i32_4 = arith.constant 0 : i32
    %18 = vector.broadcast %c0_i32_4 : i32 to vector<8x512xi32>
    %19 = arith.cmpi eq, %17, %18 : vector<8x512xi32>
    %cst = arith.constant 0.000000e+00 : f32
    %20 = vector.broadcast %cst : f32 to vector<8x512xf32>
    %21 = arith.select %19, %0, %20 : vector<8x512xi1>, vector<8x512xf32>
    %22 = arith.subf %0, %21 : vector<8x512xf32>
    %cst_5 = arith.constant dense<0.000000e+00> : vector<8xf32>
    %23 = vector.multi_reduction <add>, %21, %cst_5 [1] : vector<8x512xf32> to vector<8xf32>
    %24 = vector.shape_cast %23 : vector<8xf32> to vector<8x1xf32>
    %c0_6 = arith.constant 0 : index
    %c0_7 = arith.constant 0 : index
    %c0_8 = arith.constant 0 : index
    %25 = vector.load %arg2[%c0_6, %c0_7, %c0_8] : memref<1x8x1xf32, #tpu.memory_space<vmem>>, vector<1x8x1xf32>
    %26 = vector.shape_cast %25 : vector<1x8x1xf32> to vector<8x1xf32>
    %27 = vector.shape_cast %24 : vector<8x1xf32> to vector<1x8x1xf32>
    tpu.vector_store %arg2[%c0_6, %c0_7, %c0_8], %27 {strides = array<i32>} : memref<1x8x1xf32, #tpu.memory_space<vmem>>, vector<1x8x1xf32>,
    %cst_9 = arith.constant dense<0.000000e+00> : vector<8xf32>
    %28 = vector.multi_reduction <add>, %22, %cst_9 [1] : vector<8x512xf32> to vector<8xf32>
    %29 = vector.shape_cast %28 : vector<8xf32> to vector<8x1xf32>
    %c0_10 = arith.constant 0 : index
    %c0_11 = arith.constant 0 : index
    %c0_12 = arith.constant 0 : index
    %30 = vector.load %arg3[%c0_10, %c0_11, %c0_12] : memref<1x8x1xf32, #tpu.memory_space<vmem>>, vector<1x8x1xf32>
    %31 = vector.shape_cast %30 : vector<1x8x1xf32> to vector<8x1xf32>
    %32 = vector.shape_cast %29 : vector<8x1xf32> to vector<1x8x1xf32>
    tpu.vector_store %arg3[%c0_10, %c0_11, %c0_12], %32 {strides = array<i32>} : memref<1x8x1xf32, #tpu.memory_space<vmem>>, vector<1x8x1xf32>,
    %33 = arith.mulf %21, %21 : vector<8x512xf32>
    %cst_13 = arith.constant dense<0.000000e+00> : vector<8xf32>
    %34 = vector.multi_reduction <add>, %33, %cst_13 [1] : vector<8x512xf32> to vector<8xf32>
    %35 = vector.shape_cast %34 : vector<8xf32> to vector<8x1xf32>
    %c0_14 = arith.constant 0 : index
    %c0_15 = arith.constant 0 : index
    %c0_16 = arith.constant 0 : index
    %36 = vector.load %arg4[%c0_14, %c0_15, %c0_16] : memref<1x8x1xf32, #tpu.memory_space<vmem>>, vector<1x8x1xf32>
    %37 = vector.shape_cast %36 : vector<1x8x1xf32> to vector<8x1xf32>
    %38 = vector.shape_cast %35 : vector<8x1xf32> to vector<1x8x1xf32>
    tpu.vector_store %arg4[%c0_14, %c0_15, %c0_16], %38 {strides = array<i32>} : memref<1x8x1xf32, #tpu.memory_space<vmem>>, vector<1x8x1xf32>,
    %39 = arith.mulf %22, %22 : vector<8x512xf32>
    %cst_17 = arith.constant dense<0.000000e+00> : vector<8xf32>
    %40 = vector.multi_reduction <add>, %39, %cst_17 [1] : vector<8x512xf32> to vector<8xf32>
    %41 = vector.shape_cast %40 : vector<8xf32> to vector<8x1xf32>
    %c0_18 = arith.constant 0 : index
    %c0_19 = arith.constant 0 : index
    %c0_20 = arith.constant 0 : index
    %42 = vector.load %arg5[%c0_18, %c0_19, %c0_20] : memref<1x8x1xf32, #tpu.memory_space<vmem>>, vector<1x8x1xf32>
    %43 = vector.shape_cast %42 : vector<1x8x1xf32> to vector<8x1xf32>
    %44 = vector.shape_cast %41 : vector<8x1xf32> to vector<1x8x1xf32>
    tpu.vector_store %arg5[%c0_18, %c0_19, %c0_20], %44 {strides = array<i32>} : memref<1x8x1xf32, #tpu.memory_space<vmem>>, vector<1x8x1xf32>,
    return
  }
  func.func @transform_0(%arg0: i32) -> (i32, i32) {
    %c0_i32 = arith.constant 0 : i32
    %c0_i32_0 = arith.constant 0 : i32
    return %c0_i32, %arg0 : i32, i32
  }
  func.func @transform_1(%arg0: i32) -> (i32, i32, i32) {
    %c0_i32 = arith.constant 0 : i32
    %c0_i32_0 = arith.constant 0 : i32
    %c0_i32_1 = arith.constant 0 : i32
    return %arg0, %c0_i32, %c0_i32_0 : i32, i32, i32
  }
  func.func @transform_2(%arg0: i32) -> (i32, i32, i32) {
    %c0_i32 = arith.constant 0 : i32
    %c0_i32_0 = arith.constant 0 : i32
    %c0_i32_1 = arith.constant 0 : i32
    return %arg0, %c0_i32, %c0_i32_0 : i32, i32, i32
  }
  func.func @transform_3(%arg0: i32) -> (i32, i32, i32) {
    %c0_i32 = arith.constant 0 : i32
    %c0_i32_0 = arith.constant 0 : i32
    %c0_i32_1 = arith.constant 0 : i32
    return %arg0, %c0_i32, %c0_i32_0 : i32, i32, i32
  }
  func.func @transform_4(%arg0: i32) -> (i32, i32, i32) {
    %c0_i32 = arith.constant 0 : i32
    %c0_i32_0 = arith.constant 0 : i32
    %c0_i32_1 = arith.constant 0 : i32
    return %arg0, %c0_i32, %c0_i32_0 : i32, i32, i32
  }
}

</mosaic_0001>

<bundles_post_ra>
// kernel: tpu_custom_call.1
= control target key start
LH: loop header
LB: loop body
LE: loop exit
PB: predicated region body
PF: predicated region fallthrough
CT: control target
= control target key end

     0   :  { %10 = vsyncpa [#allocation3], 0  ;;  %s168_s15 = smov [#allocation2]   ;;  %s218_s0 = inlined_call_operand.hbm [shape: f32[8,512], index: 0, kind: input, shape index: {}]   ;;  %s219_s1 = inlined_call_operand.vmem [shape: f32[1,8,1], index: 1, kind: output, shape index: {0}]   ;;  %s220_s2 = inlined_call_operand.vmem [shape: f32[1,8,1], index: 2, kind: output, shape index: {1}]   ;;  %s221_s3 = inlined_call_operand.vmem [shape: f32[1,8,1], index: 3, kind: output, shape index: {2}]   ;;  %s222_s4 = inlined_call_operand.vmem [shape: f32[1,8,1], index: 4, kind: output, shape index: {3}]  }
   0x1   :  { %s17_s16 = sshll.u32 %s168_s15, 4  ;;  %s144_s19 = scalar_lea.hbm %s218_s0, 512  ;;  %s18_s16 = int_to_ptr.vmem [resolvable:$true] %s17_s16 }
   0x2   :  { %p145_p0 = scmp.ne.s32.totalorder %s218_s0, %s144_s19  ;;  %p148_p1 = scmp.lt.u32.totalorder %s144_s19, %s218_s0 }
   0x4   :  { %p150_p2 = pnand %p148_p1, %p145_p0 }
   0x6   :  { %153 = shalt.err (!%p150_p2)
}
   0x7   :  { %s154_s24 = scalar_lea.vmem %s18_s16, 512  ;;  %p159_p4 = scmp.lt.s32.totalorder %s18_s16, %s18_s16 }
   0x8   :  { %p155_p3 = scmp.ne.s32.totalorder %s18_s16, %s154_s24  ;;  %p160_p5 = scmp.lt.s32.totalorder %s154_s24, %s154_s24 }
   0xa   :  { %p161_p6 = por %p160_p5, %p159_p4 }
   0xc   :  { %p162_p7 = pnand %p161_p6, %p155_p3 }
   0xe   :  { %165 = shalt.err (!%p162_p7)
}
   0xf   :  { %20 = dma.hbm_to_vmem [thread:$0]  %s218_s0, 512, %s18_s16, [#allocation3]  }
  0x10   :  { %166 = dma.done.wait [#allocation3], 512  }
  0x11   :  { %167 = vsyncadd [#allocation3], 4294966784  ;;  %v28_v0 = vlaneseq  ;;  %v24_v9 = vld [vmem:[#allocation2] sm:$0xff]  ;;  %v25_v10 = vld [vmem:[#allocation2 + $0x8] sm:$0xff]  ;;  %vm98_vm4 = vcmask 7168  }
  0x12   :  { %v26_v11 = vld [vmem:[#allocation2 + $0x10] sm:$0xff]  ;;  %v27_v12 = vld [vmem:[#allocation2 + $0x18] sm:$0xff] }
  0x13   :  { %v29_v1 = vand.u32 127, %v28_v0 }
  0x15   :  { %v30_v2 = vadd.s32 128, %v29_v1  ;;  %v31_v3 = vadd.s32 256, %v29_v1  ;;  %v32_v4 = vadd.s32 384, %v29_v1  ;;  %v37_v5 = vand.u32 1, %v29_v1 }
  0x17   :  { %v44_v6 = vand.u32 1, %v30_v2  ;;  %v51_v7 = vand.u32 1, %v31_v3  ;;  %v58_v8 = vand.u32 1, %v32_v4  ;;  %vm81_vm0 = vcmp.eq.s32.totalorder %v37_v5, 0 }
  0x18   :  { %v85_v13 = vsel %vm81_vm0, %v24_v9, 0.0 }
  0x19   :  { %vm82_vm1 = vcmp.eq.s32.totalorder %v44_v6, 0  ;;  %vm83_vm2 = vcmp.eq.s32.totalorder %v51_v7, 0  ;;  %vm84_vm3 = vcmp.eq.s32.totalorder %v58_v8, 0  ;;  %v106_v17 = vmul.f32 %v85_v13, %v85_v13 }
  0x1a   :  { %v86_v14 = vsel %vm82_vm1, %v25_v10, 0.0  ;;  %v87_v15 = vsel %vm83_vm2, %v26_v11, 0.0  ;;  %v88_v16 = vsel %vm84_vm3, %v27_v12, 0.0  ;;  %v89_v21 = vsub.f32 %v24_v9, %v85_v13 }
  0x1b   :  { %v107_v18 = vmul.f32 %v86_v14, %v86_v14  ;;  %v108_v19 = vmul.f32 %v87_v15, %v87_v15  ;;  %v93_v20 = vadd.f32 %v86_v14, %v85_v13  ;;  %v90_v22 = vsub.f32 %v25_v10, %v86_v14 }
  0x1c   :  { %v91_v23 = vsub.f32 %v26_v11, %v87_v15  ;;  %v92_v24 = vsub.f32 %v27_v12, %v88_v16  ;;  %v109_v25 = vmul.f32 %v88_v16, %v88_v16  ;;  %v116_v28 = vmul.f32 %v89_v21, %v89_v21 }
  0x1d   :  { %v110_v26 = vadd.f32 %v107_v18, %v106_v17  ;;  %v94_v27 = vadd.f32 %v93_v20, %v87_v15  ;;  %v117_v29 = vmul.f32 %v90_v22, %v90_v22  ;;  %v100_v33 = vadd.f32 %v90_v22, %v89_v21 }
  0x1e   :  { %v118_v30 = vmul.f32 %v91_v23, %v91_v23  ;;  %v119_v34 = vmul.f32 %v92_v24, %v92_v24 }
  0x1f   :  { %v111_v31 = vadd.f32 %v110_v26, %v108_v19  ;;  %v95_v32 = vadd.f32 %v94_v27, %v88_v16  ;;  %v120_v35 = vadd.f32 %v117_v29, %v116_v28  ;;  %v101_v37 = vadd.f32 %v100_v33, %v91_v23 }
  0x21   :  { %v112_v36 = vadd.f32 %v111_v31, %v109_v25  ;;  %96 = vadd.xlane.f32.xlu0 %v95_v32  ;;  %v121_v38 = vadd.f32 %v120_v35, %v118_v30  ;;  %v102_v39 = vadd.f32 %v101_v37, %v92_v24 }
  0x23   :  { %113 = vadd.xlane.f32.xlu1 %v112_v36  ;;  %v122_v40 = vadd.f32 %v121_v38, %v119_v34 }
  0x25   :  { %103 = vadd.xlane.f32.xlu0 %v102_v39 }
  0x27   :  { %123 = vadd.xlane.f32.xlu1 %v122_v40 }
  0xae   :  { %v97_v41 = vpop.xlane.xlu0 %96 }
  0xaf   :  { %99 = vst.msk [vmem:[%s219_s1] sm:$0xff] %vm98_vm4, %v97_v41 }
  0xb0   :  { %v114_v42 = vpop.xlane.xlu1 %113 }
  0xb1   :  { %115 = vst.msk [vmem:[%s221_s3] sm:$0xff] %vm98_vm4, %v114_v42 }
  0xb2   :  { %v104_v43 = vpop.xlane.xlu0 %103 }
  0xb3   :  { %105 = vst.msk [vmem:[%s220_s2] sm:$0xff] %vm98_vm4, %v104_v43 }
  0xb4   :  { %v124_v44 = vpop.xlane.xlu1 %123 }
  0xb5   :  { %125 = vst.msk [vmem:[%s222_s4] sm:$0xff] %vm98_vm4, %v124_v44 }
  0xb6   :  { %142 = vsyncpa [#allocation3], 1 }

</bundles_post_ra>
